<compile_context>
chip_gen: v7x
topology: tpu7x:2x2x1
jax: 0.10.0
libtpu: 0.0.40
codegen_flags: <defaults>
</compile_context>

<pallas_src>
import math
from functools import partial

import jax
import jax.numpy as jnp
from jax.experimental import pallas as pl
from jax.experimental.pallas import tpu as pltpu

EPS = 1e-6
LOG_2PI = math.log(2.0 * math.pi)


def _normal_decoder_kernel(samples_ref, x_ref, w_ref, b_ref, logvar_ref,
                           out_ref, acc_ref, nhiv_ref, const_ref, *,
                           t_total, tile_b, tile_t, needs_mask):
    ti = pl.program_id(1)
    nt = pl.num_programs(1)
    dx = w_ref.shape[0]
    dy = w_ref.shape[1]
    rows = tile_b * tile_t

    @pl.when(ti == 0)
    def _init():
        # Hoisted parameter math: runs once per batch tile, not per T tile.
        #   var   = softplus(logvar) + eps          (overflow-safe softplus)
        #   nhiv  = -0.5 / var                      (column vector for the MXU dot)
        #   const = -0.5 * (sum_j log var_j + dy*log(2*pi))
        lv = logvar_ref[...]                                            # (dy, 1)
        sp = jnp.where(lv > 0, lv + jnp.log1p(jnp.exp(-lv)), jnp.log1p(jnp.exp(lv)))
        var = sp + EPS
        nhiv_ref[...] = -0.5 * pl.reciprocal(var)                       # (dy, 1)
        log_var_sum = jnp.sum(jnp.log(var), axis=0, keepdims=True)      # (1, 1)
        const_ref[...] = -0.5 * (log_var_sum + jnp.float32(dy * LOG_2PI))
        acc_ref[...] = jnp.zeros_like(acc_ref)

    # Fold the batch tile into the row dimension: (tile_b, tile_t, *) -> (rows, *).
    s = samples_ref[...].reshape(rows, dx)
    xt = x_ref[...].reshape(rows, dy)

    # mu = samples @ W + b   (MXU)
    mu = jnp.dot(s, w_ref[...], preferred_element_type=jnp.float32) + b_ref[...]
    d = xt - mu                                                         # (rows, dy)

    # Per-column scale + dy-reduction on the (otherwise idle) MXU:
    # (rows, dy) @ (dy, 1) -> (rows, 1)
    contrib = jnp.dot(d * d, nhiv_ref[...], preferred_element_type=jnp.float32)

    if needs_mask:
        # Mask rows that fall beyond T (only when the last T tile is partial).
        r = jax.lax.broadcasted_iota(jnp.int32, (rows, 1), 0)
        t_local = r % tile_t
        contrib = jnp.where((ti * tile_t + t_local) < t_total, contrib, 0.0)

    acc_ref[...] += contrib

    @pl.when(ti == nt - 1)
    def _finalize():
        if tile_b == 1:
            per_b = jnp.sum(acc_ref[...], axis=0, keepdims=True)        # (1, 1)
        else:
            per_b = jnp.sum(acc_ref[...].reshape(tile_b, tile_t),
                            axis=1, keepdims=True)                      # (tile_b, 1)
        total = per_b + jnp.float32(t_total) * const_ref[...]
        out_ref[...] = total.reshape(tile_b, 1, 1)


def _plan_tiles(B, T, dx, dy, *, bytes_budget=6 << 20, max_rows=4096):
    """Pick (tile_b, tile_t): a few MiB of streamed activations and many rows per
    grid step, without relying on T being divisible or falling back to huge tiles."""
    bytes_per_row = 4 * (dx + dy)
    rows_cap = max(8, bytes_budget // bytes_per_row)
    rows_cap = min(rows_cap, max_rows)

    if T <= rows_cap:
        tile_t = T                              # whole T per step (full-dim layout rule)
        tile_b = max(1, min(B, rows_cap // max(T, 1)))
        if B > 1:                               # keep >=2 batch-grid entries (megacore)
            tile_b = min(tile_b, (B + 1) // 2)
    else:
        tile_t = max(8, (rows_cap // 8) * 8)    # multiple of 8; partial tail is masked
        tile_b = 1
    return tile_b, tile_t


def _vmem_limit_bytes():
    """~75% of physical VMEM (96 MiB on v5e/v6e, 48 MiB on v7x), capped for safety."""
    try:
        cap = int(pltpu.get_tpu_info().vmem_capacity_bytes)
    except Exception:
        cap = 64 << 20
    return max(32 << 20, min((cap * 3) // 4, 100 << 20))


def normal_decoder_forward(samples, x, w, b, logvar):
    B, T, dx = samples.shape
    dy = w.shape[1]

    tile_b, tile_t = _plan_tiles(B, T, dx, dy)
    grid_b = -(-B // tile_b)
    grid_t = -(-T // tile_t)
    needs_mask = (grid_t * tile_t != T)
    rows = tile_b * tile_t

    logvar_col = logvar.reshape(dy, 1)          # column layout for the in-kernel dot

    kernel = partial(_normal_decoder_kernel, t_total=T, tile_b=tile_b,
                     tile_t=tile_t, needs_mask=needs_mask)

    out = pl.pallas_call(
        kernel,
        out_shape=jax.ShapeDtypeStruct((B, 1, 1), jnp.float32),
        grid_spec=pltpu.PrefetchScalarGridSpec(
            num_scalar_prefetch=0,
            grid=(grid_b, grid_t),
            in_specs=[
                # Streamed activations: pipelined HBM->VMEM DMA per grid step.
                pl.BlockSpec((tile_b, tile_t, dx), lambda bi, ti: (bi, ti, 0)),
                pl.BlockSpec((tile_b, tile_t, dy), lambda bi, ti: (bi, ti, 0)),
                # Parameters: constant block index -> fetched once, VMEM-resident.
                pl.BlockSpec((dx, dy), lambda bi, ti: (0, 0)),
                pl.BlockSpec((1, dy), lambda bi, ti: (0, 0)),
                pl.BlockSpec((dy, 1), lambda bi, ti: (0, 0)),
            ],
            # Same output block across the reduction (T) axis -> resident accumulator.
            out_specs=pl.BlockSpec((tile_b, 1, 1), lambda bi, ti: (bi, 0, 0)),
            scratch_shapes=[
                pltpu.VMEM((rows, 1), jnp.float32),   # per-row quadratic accumulator
                pltpu.VMEM((dy, 1), jnp.float32),     # cached -0.5 / var
                pltpu.VMEM((1, 1), jnp.float32),      # cached constant log-prob term
            ],
        ),
        compiler_params=pltpu.CompilerParams(
            dimension_semantics=("parallel", "arbitrary"),
            vmem_limit_bytes=_vmem_limit_bytes(),
        ),
    )(samples, x, w, b, logvar_col)
    return out[:, 0, 0]


def reference_forward(samples, x, w, b, logvar):
    mu = jnp.einsum("btd,de->bte", samples, w) + b[0]
    var = jax.nn.softplus(logvar) + EPS                      # (1, dy)
    std = jnp.sqrt(var)
    lp = (-0.5 * ((x - mu) / std) ** 2
          - jnp.log(std)
          - 0.5 * jnp.log(2.0 * jnp.pi))
    return jnp.sum(lp, axis=(-1, -2))


if __name__ == "__main__":
    B, T, dx, dy = 2, 8, 32, 16
    key = jax.random.PRNGKey(0)
    k_s, k_x, k_w, k_b, k_lv = jax.random.split(key, 5)

    samples = jax.random.normal(k_s, (B, T, dx), dtype=jnp.float32)
    x = jax.random.normal(k_x, (B, T, dy), dtype=jnp.float32)

    # Deterministic parameter init (mirrors nn.Linear's uniform(-1/sqrt(dx), 1/sqrt(dx)))
    bound = 1.0 / jnp.sqrt(jnp.float32(dx))
    w = jax.random.uniform(k_w, (dx, dy), jnp.float32, -bound, bound)   # transposed Linear weight
    b = jax.random.uniform(k_b, (1, dy), jnp.float32, -bound, bound)
    logvar = 0.01 * jax.random.normal(k_lv, (1, dy), dtype=jnp.float32)

    out = normal_decoder_forward(samples, x, w, b, logvar)
    out = jax.block_until_ready(out)

    ref = reference_forward(samples, x, w, b, logvar)
    assert out.shape == (B,)
    assert jnp.allclose(out, ref, rtol=1e-5, atol=1e-4), (out, ref)

    print("KERNEL_OK")
</pallas_src>

<mosaic_0001>
module attributes {stable_mosaic.version = 11 : i64} {
  func.func @_normal_decoder_kernel(%arg0: i32, %arg1: i32, %arg2: memref<1x8x32xf32, #tpu.memory_space<vmem>>, %arg3: memref<1x8x16xf32, #tpu.memory_space<vmem>>, %arg4: memref<32x16xf32, #tpu.memory_space<vmem>>, %arg5: memref<1x16xf32, #tpu.memory_space<vmem>>, %arg6: memref<16x1xf32, #tpu.memory_space<vmem>>, %arg7: memref<1x1x1xf32, #tpu.memory_space<vmem>>, %arg8: memref<8x1xf32, #tpu.memory_space<vmem>>, %arg9: memref<16x1xf32, #tpu.memory_space<vmem>>, %arg10: memref<1x1xf32, #tpu.memory_space<vmem>>) attributes {dimension_semantics = [#tpu.dimension_semantics<parallel>, #tpu.dimension_semantics<arbitrary>], iteration_bounds = array<i64: 2, 1>, scalar_prefetch = 0 : i64, scratch_operands = 3 : i64, tpu.core_type = #tpu.core_type<tc>, window_params = [{transform_indices = @transform_0, window_bounds = array<i64: 1, 8, 32>}, {transform_indices = @transform_1, window_bounds = array<i64: 1, 8, 16>}, {pipeline_mode = #tpu.pipeline_mode<synchronous>, transform_indices = @transform_2, window_bounds = array<i64: 32, 16>}, {pipeline_mode = #tpu.pipeline_mode<synchronous>, transform_indices = @transform_3, window_bounds = array<i64: 1, 16>}, {pipeline_mode = #tpu.pipeline_mode<synchronous>, transform_indices = @transform_4, window_bounds = array<i64: 16, 1>}, {transform_indices = @transform_5, window_bounds = array<i64: 1, 1, 1>}]} {
    %c0_i32 = arith.constant 0 : i32
    %0 = arith.cmpi eq, %arg1, %c0_i32 : i32
    %1 = arith.extui %0 : i1 to i32
    %c0_i32_0 = arith.constant 0 : i32
    %2 = arith.cmpi ne, %1, %c0_i32_0 : i32
    scf.if %2 {
      %c0_19 = arith.constant 0 : index
      %c0_20 = arith.constant 0 : index
      %22 = vector.load %arg6[%c0_19, %c0_20] : memref<16x1xf32, #tpu.memory_space<vmem>>, vector<16x1xf32>
      %cst_21 = arith.constant 0.000000e+00 : f32
      %23 = vector.broadcast %cst_21 : f32 to vector<16x1xf32>
      %24 = arith.cmpf ogt, %22, %23 : vector<16x1xf32>
      %cst_22 = arith.constant 0.000000e+00 : f32
      %25 = vector.broadcast %cst_22 : f32 to vector<16x1xf32>
      %26 = arith.subf %25, %22 : vector<16x1xf32>
      %27 = math.exp %26 : vector<16x1xf32>
      %28 = math.log1p %27 : vector<16x1xf32>
      %29 = arith.addf %22, %28 : vector<16x1xf32>
      %30 = math.exp %22 : vector<16x1xf32>
      %31 = math.log1p %30 : vector<16x1xf32>
      %32 = arith.select %24, %29, %31 : vector<16x1xi1>, vector<16x1xf32>
      %cst_23 = arith.constant 9.99999997E-7 : f32
      %33 = vector.broadcast %cst_23 : f32 to vector<16x1xf32>
      %34 = arith.addf %32, %33 : vector<16x1xf32>
      %35 = tpu.reciprocal %34 : vector<16x1xf32> -> vector<16x1xf32>
      %cst_24 = arith.constant -5.000000e-01 : f32
      %36 = vector.broadcast %cst_24 : f32 to vector<16x1xf32>
      %37 = arith.mulf %36, %35 : vector<16x1xf32>
      %c0_25 = arith.constant 0 : index
      %c0_26 = arith.constant 0 : index
      %38 = vector.load %arg9[%c0_25, %c0_26] : memref<16x1xf32, #tpu.memory_space<vmem>>, vector<16x1xf32>
      tpu.vector_store %arg9[%c0_25, %c0_26], %37 {strides = array<i32>} : memref<16x1xf32, #tpu.memory_space<vmem>>, vector<16x1xf32>,
      %39 = math.log %34 : vector<16x1xf32>
      %cst_27 = arith.constant dense<0.000000e+00> : vector<1xf32>
      %40 = vector.multi_reduction <add>, %39, %cst_27 [0] : vector<16x1xf32> to vector<1xf32>
      %41 = vector.shape_cast %40 : vector<1xf32> to vector<1x1xf32>
      %cst_28 = arith.constant 29.4060326 : f32
      %42 = vector.broadcast %cst_28 : f32 to vector<1x1xf32>
      %43 = arith.addf %41, %42 : vector<1x1xf32>
      %cst_29 = arith.constant -5.000000e-01 : f32
      %44 = vector.broadcast %cst_29 : f32 to vector<1x1xf32>
      %45 = arith.mulf %44, %43 : vector<1x1xf32>
      %c0_30 = arith.constant 0 : index
      %c0_31 = arith.constant 0 : index
      %46 = vector.load %arg10[%c0_30, %c0_31] : memref<1x1xf32, #tpu.memory_space<vmem>>, vector<1x1xf32>
      tpu.vector_store %arg10[%c0_30, %c0_31], %45 {strides = array<i32>} : memref<1x1xf32, #tpu.memory_space<vmem>>, vector<1x1xf32>,
      %cst_32 = arith.constant 0.000000e+00 : f32
      %47 = vector.broadcast %cst_32 : f32 to vector<8x1xf32>
      %c0_33 = arith.constant 0 : index
      %c0_34 = arith.constant 0 : index
      %48 = vector.load %arg8[%c0_33, %c0_34] : memref<8x1xf32, #tpu.memory_space<vmem>>, vector<8x1xf32>
      tpu.vector_store %arg8[%c0_33, %c0_34], %47 {strides = array<i32>} : memref<8x1xf32, #tpu.memory_space<vmem>>, vector<8x1xf32>,
    } else {
    }
    %c0 = arith.constant 0 : index
    %c0_1 = arith.constant 0 : index
    %c0_2 = arith.constant 0 : index
    %3 = vector.load %arg2[%c0, %c0_1, %c0_2] : memref<1x8x32xf32, #tpu.memory_space<vmem>>, vector<1x8x32xf32>
    %4 = vector.shape_cast %3 : vector<1x8x32xf32> to vector<8x32xf32>
    %c0_3 = arith.constant 0 : index
    %c0_4 = arith.constant 0 : index
    %c0_5 = arith.constant 0 : index
    %5 = vector.load %arg3[%c0_3, %c0_4, %c0_5] : memref<1x8x16xf32, #tpu.memory_space<vmem>>, vector<1x8x16xf32>
    %6 = vector.shape_cast %5 : vector<1x8x16xf32> to vector<8x16xf32>
    %c0_6 = arith.constant 0 : index
    %c0_7 = arith.constant 0 : index
    %7 = vector.load %arg4[%c0_6, %c0_7] : memref<32x16xf32, #tpu.memory_space<vmem>>, vector<32x16xf32>
    %cst = arith.constant dense<0.000000e+00> : vector<8x16xf32>
    %8 = tpu.matmul %4, %7, %cst {dimension_numbers = #tpu.dot_dimension_numbers<[1], [0], [0], [1], [0, 0, 1, 1], [], []>} : vector<8x32xf32>, vector<32x16xf32>, vector<8x16xf32> -> vector<8x16xf32>
    %c0_8 = arith.constant 0 : index
    %c0_9 = arith.constant 0 : index
    %9 = vector.load %arg5[%c0_8, %c0_9] : memref<1x16xf32, #tpu.memory_space<vmem>>, vector<1x16xf32>
    %10 = vector.broadcast %9 : vector<1x16xf32> to vector<8x16xf32>
    %11 = arith.addf %8, %10 : vector<8x16xf32>
    %12 = arith.subf %6, %11 : vector<8x16xf32>
    %13 = arith.mulf %12, %12 : vector<8x16xf32>
    %c0_10 = arith.constant 0 : index
    %c0_11 = arith.constant 0 : index
    %14 = vector.load %arg9[%c0_10, %c0_11] : memref<16x1xf32, #tpu.memory_space<vmem>>, vector<16x1xf32>
    %cst_12 = arith.constant dense<0.000000e+00> : vector<8x1xf32>
    %15 = tpu.matmul %13, %14, %cst_12 {dimension_numbers = #tpu.dot_dimension_numbers<[1], [0], [0], [1], [0, 0, 1, 1], [], []>} : vector<8x16xf32>, vector<16x1xf32>, vector<8x1xf32> -> vector<8x1xf32>
    %c0_13 = arith.constant 0 : index
    %c0_14 = arith.constant 0 : index
    %16 = vector.load %arg8[%c0_13, %c0_14] : memref<8x1xf32, #tpu.memory_space<vmem>>, vector<8x1xf32>
    %17 = arith.addf %16, %15 : vector<8x1xf32>
    %c0_15 = arith.constant 0 : index
    %c0_16 = arith.constant 0 : index
    %18 = vector.load %arg8[%c0_15, %c0_16] : memref<8x1xf32, #tpu.memory_space<vmem>>, vector<8x1xf32>
    tpu.vector_store %arg8[%c0_15, %c0_16], %17 {strides = array<i32>} : memref<8x1xf32, #tpu.memory_space<vmem>>, vector<8x1xf32>,
    %c0_i32_17 = arith.constant 0 : i32
    %19 = arith.cmpi eq, %arg1, %c0_i32_17 : i32
    %20 = arith.extui %19 : i1 to i32
    %c0_i32_18 = arith.constant 0 : i32
    %21 = arith.cmpi ne, %20, %c0_i32_18 : i32
    scf.if %21 {
      %c0_19 = arith.constant 0 : index
      %c0_20 = arith.constant 0 : index
      %22 = vector.load %arg8[%c0_19, %c0_20] : memref<8x1xf32, #tpu.memory_space<vmem>>, vector<8x1xf32>
      %cst_21 = arith.constant dense<0.000000e+00> : vector<1xf32>
      %23 = vector.multi_reduction <add>, %22, %cst_21 [0] : vector<8x1xf32> to vector<1xf32>
      %24 = vector.shape_cast %23 : vector<1xf32> to vector<1x1xf32>
      %c0_22 = arith.constant 0 : index
      %c0_23 = arith.constant 0 : index
      %25 = vector.load %arg10[%c0_22, %c0_23] : memref<1x1xf32, #tpu.memory_space<vmem>>, vector<1x1xf32>
      %cst_24 = arith.constant 8.000000e+00 : f32
      %26 = vector.broadcast %cst_24 : f32 to vector<1x1xf32>
      %27 = arith.mulf %26, %25 : vector<1x1xf32>
      %28 = arith.addf %24, %27 : vector<1x1xf32>
      %29 = vector.shape_cast %28 : vector<1x1xf32> to vector<1x1x1xf32>
      %c0_25 = arith.constant 0 : index
      %c0_26 = arith.constant 0 : index
      %c0_27 = arith.constant 0 : index
      %30 = vector.load %arg7[%c0_25, %c0_26, %c0_27] : memref<1x1x1xf32, #tpu.memory_space<vmem>>, vector<1x1x1xf32>
      tpu.vector_store %arg7[%c0_25, %c0_26, %c0_27], %29 {strides = array<i32>} : memref<1x1x1xf32, #tpu.memory_space<vmem>>, vector<1x1x1xf32>,
    } else {
    }
    return
  }
  func.func @transform_0(%arg0: i32, %arg1: i32) -> (i32, i32, i32) {
    %c0_i32 = arith.constant 0 : i32
    %c0_i32_0 = arith.constant 0 : i32
    return %arg0, %arg1, %c0_i32 : i32, i32, i32
  }
  func.func @transform_1(%arg0: i32, %arg1: i32) -> (i32, i32, i32) {
    %c0_i32 = arith.constant 0 : i32
    %c0_i32_0 = arith.constant 0 : i32
    return %arg0, %arg1, %c0_i32 : i32, i32, i32
  }
  func.func @transform_2(%arg0: i32, %arg1: i32) -> (i32, i32) {
    %c0_i32 = arith.constant 0 : i32
    %c0_i32_0 = arith.constant 0 : i32
    %c0_i32_1 = arith.constant 0 : i32
    return %c0_i32, %c0_i32_0 : i32, i32
  }
  func.func @transform_3(%arg0: i32, %arg1: i32) -> (i32, i32) {
    %c0_i32 = arith.constant 0 : i32
    %c0_i32_0 = arith.constant 0 : i32
    %c0_i32_1 = arith.constant 0 : i32
    return %c0_i32, %c0_i32_0 : i32, i32
  }
  func.func @transform_4(%arg0: i32, %arg1: i32) -> (i32, i32) {
    %c0_i32 = arith.constant 0 : i32
    %c0_i32_0 = arith.constant 0 : i32
    %c0_i32_1 = arith.constant 0 : i32
    return %c0_i32, %c0_i32_0 : i32, i32
  }
  func.func @transform_5(%arg0: i32, %arg1: i32) -> (i32, i32, i32) {
    %c0_i32 = arith.constant 0 : i32
    %c0_i32_0 = arith.constant 0 : i32
    %c0_i32_1 = arith.constant 0 : i32
    return %arg0, %c0_i32, %c0_i32_0 : i32, i32, i32
  }
}

</mosaic_0001>

<bundles_post_ra>
// kernel: tpu_custom_call.1
= control target key start
LH: loop header
LB: loop body
LE: loop exit
PB: predicated region body
PF: predicated region fallthrough
CT: control target
= control target key end

     0   :  { %s767_s18 = smov 0   ;;  %s769_s19 = smov 0   ;;  %s869_s0 = inlined_call_operand.vmem [shape: f32[2,8,32], index: 0, kind: input, shape index: {}]   ;;  %s870_s1 = inlined_call_operand.vmem [shape: f32[2,8,16], index: 1, kind: input, shape index: {}]   ;;  %s871_s2 = inlined_call_operand.vmem [shape: f32[32,16], index: 2, kind: input, shape index: {}]   ;;  %s872_s3 = inlined_call_operand.vmem [shape: f32[1,16], index: 3, kind: input, shape index: {}]   ;;  %s873_s4 = inlined_call_operand.vmem [shape: f32[16,1], index: 4, kind: input, shape index: {}]   ;;  %s874_s5 = inlined_call_operand.vmem [shape: f32[2,1,1], index: 5, kind: output, shape index: {}]  }
   0x1   :  { %s771_s20 = smov 0  }
   0x2 LB: > { %s27_s21 = sadd.s32 1, %s728_s19  ;;  %p616_p0 = scmp.ge.s32.totalorder %s732_s20, 1  ;;  %s732_s20 = sphi %s771_s20, %s15_s20   ;;  %s728_s19 = sphi %s769_s19, %s880_s19   ;;  %s724_s18 = sphi %s767_s18, %s879_s18  }
   0x3   : > { %p29_p1 = scmp.ge.s32.totalorder %s27_s21, 2  ;;  %p217_p2 = scmp.lt.s32.totalorder %s732_s20, 3 }
   0x5   : > { %s882_s21 = smov (%p29_p1, %s27_s21), 0  ;;  %p218_p3 = pnand %p616_p0, %p217_p2 }
   0x6   : > { %v356_v0 = vld [vmem:[%s871_s2] sm:$0xff] (!%p218_p3)  ;;  %v357_v1 = vld [vmem:[%s871_s2 + $0x8] sm:$0xff] (!%p218_p3)  ;;  %v358_v2 = vld [vmem:[%s871_s2 + $0x10] sm:$0xff] (!%p218_p3)  ;;  %vm333_vm0 = vcmask (!%p218_p3), 7168   ;;  %v734_v3 = vmov (!%p218_p3), 0.0|0.0   ;;  %p252_p4 = scmp.lt.s32.totalorder (!%p218_p3), %s724_s18, 1 }
   0x7   : > { %221 = sbr.rel (%p218_p3) target bundleno = 474 (0x1da), region = 40  ;;  %650 = vmatprep.subr.bf16.mxu0 (!%p218_p3), %v734_v3  ;;  %v651_v4 = vpack.c.bf16 (!%p218_p3), %v357_v1, %v356_v0  ;;  %v359_v5 = vld [vmem:[%s871_s2 + $0x18] sm:$0xff] (!%p218_p3)  ;;  %v802_v6 = vld [vmem:[%s873_s4] sm:$0xff] (!%p218_p3)  ;;  %v807_v7 = vld [vmem:[%s873_s4 + $0x8] sm:$0xff] (!%p218_p3)  ;;  %656 = vmatprep.subr.bf16.mxu1 (!%p218_p3), %v734_v3  ;;  %v735_v9 = vmov (!%p218_p3), 0.0   ;;  %vm736_vm1 = vmmov (!%p218_p3), 0  }
   0x8   : > { %v277_v8 = vsub.f32 (!%p218_p3), 0.0, %v802_v6  ;;  %353 = vst.msk [vmem:[#allocation2] sm:$0xff] (!%p218_p3), %vm333_vm0, %v735_v9  ;;  %640 = vmatprep.mubr.msk.f32.mxu0 (!%p218_p3), %vm736_vm1, %v735_v9  ;;  %647 = vmatprep.mubr.msk.f32.mxu1 (!%p218_p3), %vm736_vm1, %v735_v9  ;;  %v654_v10 = vpack.c.bf16 (!%p218_p3), %v359_v5, %v358_v2  ;;  %v278_v11 = vsub.f32 (!%p218_p3), 0.0, %v807_v7  ;;  %v303_v12 = vmul.f32 (!%p218_p3), 1.442695, %v802_v6 }
   0x9   : > { %652 = vmatpush3.bf16.msra.mxu0 (!%p218_p3), %v651_v4  ;;  %v305_v14 = vmul.f32 (!%p218_p3), 1.442695, %v807_v7  ;;  %vm367_vm2 = vcmask (!%p218_p3), 261120   ;;  %vm275_vm6 = vcmp.gt.f32.partialorder (!%p218_p3), %v802_v6, 0.0  ;;  %vm276_vm8 = vcmp.gt.f32.partialorder (!%p218_p3), %v807_v7, 0.0 }
   0xa   : > { %653 = vmatprep.subr.bf16.mxu0 (!%p218_p3), %v734_v3  ;;  %v279_v13 = vmul.f32 (!%p218_p3), 1.442695, %v277_v8  ;;  %v281_v15 = vmul.f32 (!%p218_p3), 1.442695, %v278_v11  ;;  %686 = vpow2.f32 (!%p218_p3), %v303_v12  ;;  %vm351_vm9 = vcmask (!%p218_p3), 0  }
   0xb   : > { %vm445_vm10 = vcmask (!%p218_p3), 130048  }
   0xc   : > { %688 = vpow2.f32 (!%p218_p3), %v279_v13 }
   0xd   : > { %655 = vmatpush3.bf16.msra.mxu0 (!%p218_p3), %v654_v10  ;;  %690 = vpow2.f32 (!%p218_p3), %v281_v15 }
   0xe   : > { %s884_s18 = smov (!%p252_p4, %s724_s18), 1  ;;  %692 = vpow2.f32 %v305_v14 }
   0xf   : > { %s617_s9 = sshll.u32 %s884_s18, 3  ;;  %s268_s24 = scalar_lea.vmem %s874_s5, %s884_s18 }
  0x10   : > { %s258_s12 = scalar_lea.vmem %s869_s0, %s617_s9  ;;  %s265_s15 = scalar_lea.vmem %s870_s1, %s617_s9 }
  0x11   : > { %v354_v16 = vld [vmem:[%s258_s12] sm:$0xff] }
  0x12   : > { %641 = vmatmul.mubr.msk.f32.vlgmr.msra.gmra.mrb[0].mxu0 %vm367_vm2, %v354_v16 }
  0x14   : > { %v687_v17 = vpop.eup %686 }
  0x15   : > { %v307_v19 = vadd.f32 1.0, %v687_v17  ;;  %v310_v25 = vmul.f32 -0.5, %v687_v17  ;;  %v313_v33 = vand.u32 2147483647, %v687_v17 }
  0x16   : > { %v689_v18 = vpop.eup %688 }
  0x17   : > { %v691_v20 = vpop.eup %690  ;;  %v283_v21 = vadd.f32 1.0, %v689_v18  ;;  %694 = vlog2.f32 %v307_v19  ;;  %v286_v24 = vmul.f32 -0.5, %v689_v18  ;;  %v289_v29 = vand.u32 2147483647, %v689_v18  ;;  %v619_v19 = vld [vmem:[%s872_s3] ss:$0 sm:$0xff] }
  0x18   : > { %v693_v22 = vpop.eup %692  ;;  %v292_v23 = vadd.f32 1.0, %v691_v20  ;;  %v295_v26 = vmul.f32 -0.5, %v691_v20  ;;  %v311_v30 = vadd.f32 1.0, %v310_v25  ;;  %v298_v34 = vand.u32 2147483647, %v691_v20 }
  0x19   : > { %696 = vlog2.f32 %v283_v21  ;;  %v316_v27 = vadd.f32 1.0, %v693_v22  ;;  %v287_v28 = vadd.f32 1.0, %v286_v24  ;;  %v319_v31 = vmul.f32 -0.5, %v693_v22 }
  0x1a   : > { %698 = vlog2.f32 %v292_v23  ;;  %v296_v32 = vadd.f32 1.0, %v295_v26  ;;  %vm824_vm3 = vcmp.lt.f32.partialorder %v289_v29, 0.0004427343  ;;  %v312_v38 = vmul.f32 %v687_v17, %v311_v30  ;;  %v519_v26 = vld [vmem:[#allocation2] sm:$0xff] }
  0x1b   : > { %700 = vlog2.f32 %v316_v27  ;;  %v288_v36 = vmul.f32 %v689_v18, %v287_v28  ;;  %v320_v39 = vadd.f32 1.0, %v319_v31  ;;  %vm828_vm4 = vcmp.lt.f32.partialorder %v313_v33, 0.0004427343 }
  0x1c   : > { %v297_v41 = vmul.f32 %v691_v20, %v296_v32  ;;  %v322_v44 = vand.u32 2147483647, %v693_v22  ;;  %vm299_vm5 = vcmp.lt.f32.partialorder %v298_v34, 0.0004427343  ;;  %v355_v20 = vld [vmem:[%s265_s15] sm:$0xff] }
  0x1d   : > { %v321_v50 = vmul.f32 %v693_v22, %v320_v39 }
  0x1e   : > { %vm323_vm7 = vcmp.lt.f32.partialorder %v322_v44, 0.0004427343 }
  0x21   : > { %v695_v35 = vpop.eup %694 }
  0x22   : > { %v309_v42 = vmul.f32 0.6931472, %v695_v35 }
  0x23   : > { %v697_v40 = vpop.eup %696 }
  0x24   : > { %v699_v45 = vpop.eup %698  ;;  %v285_v46 = vmul.f32 0.6931472, %v697_v40  ;;  %v315_v49 = vsel %vm828_vm4, %v312_v38, %v309_v42 }
  0x25   : > { %v294_v47 = vmul.f32 0.6931472, %v699_v45  ;;  %v701_v51 = vpop.eup %700 }
  0x26   : > { %v291_v48 = vsel %vm824_vm3, %v288_v36, %v285_v46  ;;  %v318_v55 = vmul.f32 0.6931472, %v701_v51 }
  0x27   : > { %v300_v52 = vsel %vm299_vm5, %v297_v41, %v294_v47  ;;  %v301_v53 = vadd.f32 %v291_v48, %v802_v6 }
  0x28   : > { %v302_v54 = vadd.f32 %v300_v52, %v807_v7  ;;  %v324_v57 = vsel %vm323_vm7, %v321_v50, %v318_v55 }
  0x29   : > { %v325_v56 = vsel %vm275_vm6, %v301_v53, %v315_v49 }
  0x2a   : > { %v327_v58 = vadd.f32 1e-06, %v325_v56  ;;  %v326_v59 = vsel %vm276_vm8, %v302_v54, %v324_v57 }
  0x2b   : > { %v328_v60 = vadd.f32 1e-06, %v326_v59 }
  0x2c   : > { %702 = vrcp.f32 %v327_v58 }
  0x2d   : > { %704 = vlog2.f32 %v327_v58 }
  0x2e   : > { %706 = vrcp.f32 %v328_v60 }
  0x2f   : > { %708 = vlog2.f32 %v328_v60 }
  0x36   : > { %v703_v61 = vpop.eup %702 }
  0x37   : > { %v705_v62 = vpop.eup %704  ;;  %v331_v63 = vmul.f32 -0.5, %v703_v61 }
  0x38   : > { %v707_v0 = vpop.eup %706  ;;  %v337_v1 = vmul.f32 0.6931472, %v705_v62 }
  0x39   : > { %v709_v2 = vpop.eup %708  ;;  %v332_v3 = vmul.f32 -0.5, %v707_v0  ;;  %334 = vst.msk [vmem:[#allocation3] sm:$0xff] %vm333_vm0, %v331_v63 }
  0x3a   : > { %v339_v4 = vmul.f32 0.6931472, %v709_v2  ;;  %v340_v5 = vsel %vm333_vm0, %v337_v1, 0.0 }
  0x3b   : > { %335 = vst.msk [vmem:[#allocation3 + $0x8] sm:$0xff] %vm333_vm0, %v332_v3 }
  0x3c   : > { %v341_v6 = vsel %vm333_vm0, %v339_v4, 0.0 }
  0x3d   : > { %v342_v7 = vadd.f32 %v341_v6, %v340_v5 }
  0x3f   : > { %v343_v8 = vrot.slane %v342_v7, 4 }
  0x40   : > { %v443_v16 = vld [vmem:[#allocation3] sm:$0xff] }
  0x41   : > { %v344_v9 = vadd.f32 %v343_v8, %v342_v7 }
  0x42   : > { %v444_v17 = vld [vmem:[#allocation3 + $0x8] sm:$0xff] }
  0x43   : > { %v345_v10 = vrot.slane %v344_v9, 2  ;;  %v657_v18 = vpack.c.bf16 %v444_v17, %v443_v16 }
  0x45   : > { %v346_v11 = vadd.f32 %v345_v10, %v344_v9  ;;  %658 = vmatpush3.bf16.msra.mxu1 %v657_v18 }
  0x47   : > { %v347_v12 = vrot.slane %v346_v11, 1 }
  0x49   : > { %v348_v13 = vadd.f32 %v347_v12, %v346_v11 }
  0x4b   : > { %v349_v14 = vadd.f32 29.406033, %v348_v13 }
  0x4d   : > { %v350_v15 = vmul.f32 -0.5, %v349_v14 }
  0x4f   : > { %352 = vst.msk [vmem:[#allocation4] sm:$0x1] %vm351_vm9, %v350_v15 }
  0x56   : > { %v534_v35 = vld [vmem:[#allocation4] sm:$0x1] }
  0x57   : > { %v535_v38 = vmul.f32 8.0, %v534_v35 }
  0xe5   : > { %v437_v21 = vpop.f32.mrb[0].mxu0 }
  0xe6   : > { %v438_v22 = vadd.f32 %v619_v19, %v437_v21  ;;  %v642_v23 = vpop.f32.mrb[1].mxu0 }
  0xe8   : > { %v441_v24 = vsub.f32 %v355_v20, %v438_v22 }
  0xea   : > { %v442_v25 = vmul.f32 %v441_v24, %v441_v24 }
  0xec   : > { %648 = vmatmul.mubr.msk.f32.vlgmr.msra.gmra.mrb[0].mxu1 %vm445_vm10, %v442_v25 }
 0x1bf   : > { %v515_v27 = vpop.f32.mrb[0].mxu1 }
 0x1c0   : > { %v520_v28 = vadd.f32 %v519_v26, %v515_v27  ;;  %v649_v29 = vpop.f32.mrb[1].mxu1 }
 0x1c2   : > { %522 = vst.msk [vmem:[#allocation2] sm:$0xff] %vm333_vm0, %v520_v28 }
 0x1c9   : > { %v526_v30 = vld [vmem:[#allocation2] sm:$0xff] }
 0x1ca   : > { %v527_v31 = vsel %vm333_vm0, %v526_v30, 0.0 }
 0x1cb   : > { %v528_v32 = vrot.slane %v527_v31, 4 }
 0x1cd   : > { %v529_v33 = vadd.f32 %v528_v32, %v527_v31 }
 0x1cf   : > { %v530_v34 = vrot.slane %v529_v33, 2 }
 0x1d1   : > { %v531_v36 = vadd.f32 %v530_v34, %v529_v33 }
 0x1d3   : > { %v532_v37 = vrot.slane %v531_v36, 1 }
 0x1d5   : > { %v533_v39 = vadd.f32 %v532_v37, %v531_v36 }
 0x1d7   : > { %v536_v40 = vadd.f32 %v535_v38, %v533_v39 }
 0x1d9   : > { %538 = vst.msk [vmem:[%s268_s24] sm:$0x1] %vm351_vm9, %v536_v40 }
 0x1da PF: > { %s15_s20 = sadd.s32 1, %s732_s20   ;;  %s879_s18 = smov %s728_s19 }
 0x1db   : > { %p12_p5 = scmp.ge.s32.totalorder %s15_s20, 4   ;;  %s880_s19 = smov %s882_s21 }
 0x1dd   :  { %14 = sbr.rel (!%p12_p5) target bundleno = 2 (0x2), region = 81 }

</bundles_post_ra>
